<compile_context>
chip_gen: v7x
topology: tpu7x:2x2x1
jax: 0.10.0
libtpu: 0.0.40
codegen_flags: <defaults>
</compile_context>

<pallas_src>
import jax
import jax.numpy as jnp
from jax.experimental import pallas as pl
from jax.experimental.pallas import tpu as pltpu


def _gumbel_softmax_kernel(logits_ref, gumbel_ref, out_ref):
    # tau = 1.0 (PyTorch default), hard=False -> plain softmax of noised logits.
    x = logits_ref[...].astype(jnp.float32) + gumbel_ref[...].astype(jnp.float32)

    # Numerically-stable softmax along the lane (last) axis.
    x = x - jnp.max(x, axis=-1, keepdims=True)
    e = jnp.exp(x)
    denom = jnp.sum(e, axis=-1, keepdims=True)
    inv = 1.0 / denom                      # (tile_c, 1) reciprocal, then one VPU mul
    out_ref[...] = (e * inv).astype(out_ref.dtype)


def pars_forward(normu: jax.Array, key: jax.Array,
                 tile_c: int = 256,
                 vmem_limit_bytes: int = 48 * 1024 * 1024) -> jax.Array:
    """Equivalent of Pars.forward(): gumbel_softmax over the flattened HW axis."""
    B, C, H, W = normu.shape
    assert B == 1
    N = H * W

    # Largest divisor of C that does not exceed the requested tile size.
    tc = min(tile_c, C)
    while C % tc != 0:
        tc -= 1

    logits = normu.reshape(C, N).astype(jnp.float32)
    # Standard Gumbel(0,1) noise, same distribution as torch's
    # -empty.exponential_().log().
    gumbel = jax.random.gumbel(key, (C, N), dtype=jnp.float32)

    out = pl.pallas_call(
        _gumbel_softmax_kernel,
        out_shape=jax.ShapeDtypeStruct((C, N), jnp.float32),
        grid=(C // tc,),
        in_specs=[
            pl.BlockSpec((tc, N), lambda i: (i, 0)),   # logits slab
            pl.BlockSpec((tc, N), lambda i: (i, 0)),   # gumbel noise slab
        ],
        out_specs=pl.BlockSpec((tc, N), lambda i: (i, 0)),
        compiler_params=pltpu.CompilerParams(
            dimension_semantics=("parallel",),          # rows independent -> both TCs on v7x
            vmem_limit_bytes=vmem_limit_bytes,          # fits 2x(3 blocks) of 256x4096 f32
        ),
    )(logits, gumbel)

    return out.reshape(B, C, H, W)


if __name__ == "__main__":
    # Small, shape-consistent version of the module's parameter:
    # torch.randn(1, 8192, 64, 64)  ->  (1, 64, 16, 16) here.
    key = jax.random.PRNGKey(0)
    k_param, k_noise = jax.random.split(key)
    normu = jax.random.normal(k_param, (1, 64, 16, 16), dtype=jnp.float32)

    y = pars_forward(normu, k_noise)
    y = jax.block_until_ready(y)

    # Sanity: softmax over the flattened HW axis sums to 1 per channel.
    row_sums = y.reshape(1, 64, -1).sum(axis=-1)
    assert y.shape == normu.shape
    assert bool(jnp.allclose(row_sums, 1.0, atol=1e-4))
    assert bool(jnp.all(y >= 0.0))

    print("KERNEL_OK")
</pallas_src>

<mosaic_0001>
module attributes {stable_mosaic.version = 11 : i64} {
  func.func @_gumbel_softmax_kernel(%arg0: i32, %arg1: memref<64x256xf32, #tpu.memory_space<vmem>>, %arg2: memref<64x256xf32, #tpu.memory_space<vmem>>, %arg3: memref<64x256xf32, #tpu.memory_space<vmem>>) attributes {dimension_semantics = [#tpu.dimension_semantics<parallel>], iteration_bounds = array<i64: 1>, scalar_prefetch = 0 : i64, scratch_operands = 0 : i64, tpu.core_type = #tpu.core_type<tc>, window_params = [{transform_indices = @transform_0, window_bounds = array<i64: 64, 256>}, {transform_indices = @transform_1, window_bounds = array<i64: 64, 256>}, {transform_indices = @transform_2, window_bounds = array<i64: 64, 256>}]} {
    %c0 = arith.constant 0 : index
    %c0_0 = arith.constant 0 : index
    %0 = vector.load %arg1[%c0, %c0_0] : memref<64x256xf32, #tpu.memory_space<vmem>>, vector<64x256xf32>
    %c0_1 = arith.constant 0 : index
    %c0_2 = arith.constant 0 : index
    %1 = vector.load %arg2[%c0_1, %c0_2] : memref<64x256xf32, #tpu.memory_space<vmem>>, vector<64x256xf32>
    %2 = arith.addf %0, %1 : vector<64x256xf32>
    %cst = arith.constant dense<0xFF800000> : vector<64xf32>
    %3 = vector.multi_reduction <maximumf>, %2, %cst [1] : vector<64x256xf32> to vector<64xf32>
    %4 = vector.shape_cast %3 : vector<64xf32> to vector<64x1xf32>
    %5 = vector.broadcast %4 : vector<64x1xf32> to vector<64x256xf32>
    %6 = arith.subf %2, %5 : vector<64x256xf32>
    %7 = math.exp %6 : vector<64x256xf32>
    %cst_3 = arith.constant dense<0.000000e+00> : vector<64xf32>
    %8 = vector.multi_reduction <add>, %7, %cst_3 [1] : vector<64x256xf32> to vector<64xf32>
    %9 = vector.shape_cast %8 : vector<64xf32> to vector<64x1xf32>
    %cst_4 = arith.constant 1.000000e+00 : f32
    %10 = vector.broadcast %cst_4 : f32 to vector<64x1xf32>
    %11 = arith.divf %10, %9 : vector<64x1xf32>
    %12 = vector.broadcast %11 : vector<64x1xf32> to vector<64x256xf32>
    %13 = arith.mulf %7, %12 : vector<64x256xf32>
    %c0_5 = arith.constant 0 : index
    %c0_6 = arith.constant 0 : index
    %14 = vector.load %arg3[%c0_5, %c0_6] : memref<64x256xf32, #tpu.memory_space<vmem>>, vector<64x256xf32>
    tpu.vector_store %arg3[%c0_5, %c0_6], %13 {strides = array<i32>} : memref<64x256xf32, #tpu.memory_space<vmem>>, vector<64x256xf32>,
    return
  }
  func.func @transform_0(%arg0: i32) -> (i32, i32) {
    %c0_i32 = arith.constant 0 : i32
    %c0_i32_0 = arith.constant 0 : i32
    return %arg0, %c0_i32 : i32, i32
  }
  func.func @transform_1(%arg0: i32) -> (i32, i32) {
    %c0_i32 = arith.constant 0 : i32
    %c0_i32_0 = arith.constant 0 : i32
    return %arg0, %c0_i32 : i32, i32
  }
  func.func @transform_2(%arg0: i32) -> (i32, i32) {
    %c0_i32 = arith.constant 0 : i32
    %c0_i32_0 = arith.constant 0 : i32
    return %arg0, %c0_i32 : i32, i32
  }
}

</mosaic_0001>

<bundles_post_ra>
// kernel: tpu_custom_call.1
= control target key start
LH: loop header
LB: loop body
LE: loop exit
PB: predicated region body
PF: predicated region fallthrough
CT: control target
= control target key end

     0   :  { %7 = vsyncpa [#allocation3], 0  ;;  %s464_s0 = inlined_call_operand.hbm [shape: f32[64,256], index: 0, kind: input, shape index: {}]   ;;  %s465_s1 = inlined_call_operand.hbm [shape: f32[64,256], index: 1, kind: input, shape index: {}]   ;;  %s466_s2 = inlined_call_operand.hbm [shape: f32[64,256], index: 2, kind: output, shape index: {}]  }
   0x1   :  { %8 = vsyncpa [#allocation6], 0 }
   0x2   :  { %9 = vsyncpa [#allocation4], 0  ;;  %s375_s9 = smov [#allocation2]   ;;  %s303_s13 = scalar_lea.hbm %s464_s0, 2048 }
   0x3   :  { %s15_s10 = sshll.u32 %s375_s9, 4  ;;  %p304_p0 = scmp.ne.s32.totalorder %s464_s0, %s303_s13  ;;  %s16_s10 = int_to_ptr.vmem [resolvable:$true] %s15_s10 }
   0x4   :  { %p307_p1 = scmp.lt.u32.totalorder %s303_s13, %s464_s0 }
   0x6   :  { %p309_p2 = pnand %p307_p1, %p304_p0 }
   0x8   :  { %312 = shalt.err (!%p309_p2)
}
   0x9   :  { %s313_s18 = scalar_lea.vmem %s16_s10, 2048  ;;  %p318_p4 = scmp.lt.s32.totalorder %s16_s10, %s16_s10 }
   0xa   :  { %p314_p3 = scmp.ne.s32.totalorder %s16_s10, %s313_s18  ;;  %p319_p5 = scmp.lt.s32.totalorder %s313_s18, %s313_s18 }
   0xc   :  { %p320_p6 = por %p319_p5, %p318_p4 }
   0xe   :  { %p321_p7 = pnand %p320_p6, %p314_p3 }
  0x10   :  { %324 = shalt.err (!%p321_p7)
}
  0x11   :  { %s376_s19 = smov 256   ;;  %s377_s20 = smov 16  }
  0x12   :  { %21 = dma.hbm_to_vmem [thread:$0]  %s464_s0, 2048, %s16_s10, [#allocation3], %s376_s19, %s376_s19, %s377_s20  }
  0x13   :  { %s378_s23 = smov [#allocation5]   ;;  %s325_s27 = scalar_lea.hbm %s465_s1, 2048 }
  0x14   :  { %s27_s24 = sshll.u32 %s378_s23, 4  ;;  %p326_p8 = scmp.ne.s32.totalorder %s465_s1, %s325_s27  ;;  %s28_s24 = int_to_ptr.vmem [resolvable:$true] %s27_s24 }
  0x15   :  { %p329_p9 = scmp.lt.u32.totalorder %s325_s27, %s465_s1 }
  0x17   :  { %p331_p10 = pnand %p329_p9, %p326_p8 }
  0x19   :  { %334 = shalt.err (!%p331_p10)
}
  0x1a   :  { %s335_s4 = scalar_lea.vmem %s28_s24, 2048  ;;  %p340_p12 = scmp.lt.s32.totalorder %s28_s24, %s28_s24 }
  0x1b   :  { %p336_p11 = scmp.ne.s32.totalorder %s28_s24, %s335_s4  ;;  %p341_p13 = scmp.lt.s32.totalorder %s335_s4, %s335_s4 }
  0x1d   :  { %p342_p0 = por %p341_p13, %p340_p12 }
  0x1f   :  { %p343_p1 = pnand %p342_p0, %p336_p11 }
  0x21   :  { %346 = shalt.err (!%p343_p1)
}
  0x22   :  { %33 = dma.hbm_to_vmem [thread:$0]  %s465_s1, 2048, %s28_s24, [#allocation6], %s376_s19, %s376_s19, %s377_s20  }
  0x23   :  { %369 = dma.done.wait [#allocation3], 2048  }
  0x24   :  { %370 = vsyncadd [#allocation3], 4294965248 }
  0x25   :  { %371 = dma.done.wait [#allocation6], 2048  }
  0x26   :  { %372 = vsyncadd [#allocation6], 4294965248  ;;  %v40_v0 = vld [vmem:[#allocation2] sm:$0xff]  ;;  %v41_v1 = vld [vmem:[#allocation2 + $0x8] sm:$0xff]  ;;  %s379_s1 = smov [#allocation7]  }
  0x27   :  { %v56_v2 = vld [vmem:[#allocation5] sm:$0xff]  ;;  %v57_v3 = vld [vmem:[#allocation5 + $0x8] sm:$0xff]  ;;  %v42_v10 = vld [vmem:[#allocation2 + $0x10] sm:$0xff]  ;;  %s237_s6 = sshll.u32 %s379_s1, 4  ;;  %s238_s6 = int_to_ptr.vmem [resolvable:$true] %s237_s6 }
  0x28   :  { %v425_v4 = vadd.f32 %v56_v2, %v40_v0  ;;  %v44_v5 = vld [vmem:[#allocation2 + $0x20] sm:$0xff]  ;;  %v45_v6 = vld [vmem:[#allocation2 + $0x28] sm:$0xff]  ;;  %v427_v7 = vadd.f32 %v57_v3, %v41_v1  ;;  %v43_v13 = vld [vmem:[#allocation2 + $0x18] sm:$0xff]  ;;  %s347_s7 = scalar_lea.vmem %s238_s6, 2048  ;;  %p352_p3 = scmp.lt.s32.totalorder %s238_s6, %s238_s6 }
  0x29   :  { %v60_v8 = vld [vmem:[#allocation5 + $0x20] sm:$0xff]  ;;  %v61_v9 = vld [vmem:[#allocation5 + $0x28] sm:$0xff]  ;;  %v58_v14 = vld [vmem:[#allocation5 + $0x10] sm:$0xff]  ;;  %p348_p2 = scmp.ne.s32.totalorder %s238_s6, %s347_s7  ;;  %p353_p4 = scmp.lt.s32.totalorder %s347_s7, %s347_s7 }
  0x2a   :  { %v76_v11 = vadd.f32 %v60_v8, %v44_v5  ;;  %v77_v12 = vadd.f32 %v61_v9, %v45_v6  ;;  %v59_v15 = vld [vmem:[#allocation5 + $0x18] sm:$0xff]  ;;  %v88_v16 = vmax.f32 %v425_v4, %v427_v7  ;;  %v431_v17 = vadd.f32 %v58_v14, %v42_v10  ;;  %v46_v19 = vld [vmem:[#allocation2 + $0x30] sm:$0xff]  ;;  %v48_v25 = vld [vmem:[#allocation2 + $0x40] sm:$0xff] }
  0x2b   :  { %v433_v18 = vadd.f32 %v59_v15, %v43_v13  ;;  %v47_v20 = vld [vmem:[#allocation2 + $0x38] sm:$0xff]  ;;  %v62_v21 = vld [vmem:[#allocation5 + $0x30] sm:$0xff]  ;;  %v49_v26 = vld [vmem:[#allocation2 + $0x48] sm:$0xff]  ;;  %p354_p5 = por %p353_p4, %p352_p3 }
  0x2c   :  { %v94_v22 = vmax.f32 %v76_v11, %v77_v12  ;;  %v63_v23 = vld [vmem:[#allocation5 + $0x38] sm:$0xff]  ;;  %v78_v24 = vadd.f32 %v62_v21, %v46_v19  ;;  %89 = vmax.xlane.f32.xlu0 %v88_v16  ;;  %v64_v29 = vld [vmem:[#allocation5 + $0x40] sm:$0xff]  ;;  %v65_v30 = vld [vmem:[#allocation5 + $0x48] sm:$0xff] }
  0x2d   :  { %v91_v27 = vmax.f32 %v431_v17, %v433_v18  ;;  %v79_v28 = vadd.f32 %v63_v23, %v47_v20  ;;  %v50_v31 = vld [vmem:[#allocation2 + $0x50] sm:$0xff]  ;;  %v437_v32 = vadd.f32 %v64_v29, %v48_v25  ;;  %v439_v33 = vadd.f32 %v65_v30, %v49_v26  ;;  %v51_v34 = vld [vmem:[#allocation2 + $0x58] sm:$0xff]  ;;  %v52_v40 = vld [vmem:[#allocation2 + $0x60] sm:$0xff]  ;;  %p355_p6 = pnand %p354_p5, %p348_p2 }
  0x2e   :  { %95 = vmax.xlane.f32.xlu1 %v94_v22  ;;  %v66_v35 = vld [vmem:[#allocation5 + $0x50] sm:$0xff]  ;;  %v67_v36 = vld [vmem:[#allocation5 + $0x58] sm:$0xff]  ;;  %v53_v41 = vld [vmem:[#allocation2 + $0x68] sm:$0xff] }
  0x2f   :  { %v97_v37 = vmax.f32 %v78_v24, %v79_v28  ;;  %v82_v38 = vadd.f32 %v66_v35, %v50_v31  ;;  %v83_v39 = vadd.f32 %v67_v36, %v51_v34  ;;  %v68_v42 = vld [vmem:[#allocation5 + $0x60] sm:$0xff]  ;;  %v69_v43 = vld [vmem:[#allocation5 + $0x68] sm:$0xff]  ;;  %v54_v44 = vld [vmem:[#allocation2 + $0x70] sm:$0xff]  ;;  %v100_v46 = vmax.f32 %v437_v32, %v439_v33 }
  0x30   :  { %v55_v45 = vld [vmem:[#allocation2 + $0x78] sm:$0xff]  ;;  %92 = vmax.xlane.f32.xlu0 %v91_v27  ;;  %v84_v47 = vadd.f32 %v68_v42, %v52_v40  ;;  %v85_v48 = vadd.f32 %v69_v43, %v53_v41  ;;  %v70_v49 = vld [vmem:[#allocation5 + $0x70] sm:$0xff] }
  0x31   :  { %v71_v50 = vld [vmem:[#allocation5 + $0x78] sm:$0xff]  ;;  %v103_v51 = vmax.f32 %v82_v38, %v83_v39  ;;  %v86_v52 = vadd.f32 %v70_v49, %v54_v44 }
  0x32   :  { %98 = vmax.xlane.f32.xlu1 %v97_v37  ;;  %v87_v53 = vadd.f32 %v71_v50, %v55_v45  ;;  %v106_v54 = vmax.f32 %v84_v47, %v85_v48 }
  0x34   :  { %101 = vmax.xlane.f32.xlu0 %v100_v46  ;;  %v109_v55 = vmax.f32 %v86_v52, %v87_v53 }
  0x36   :  { %104 = vmax.xlane.f32.xlu1 %v103_v51 }
  0x38   :  { %107 = vmax.xlane.f32.xlu0 %v106_v54 }
  0x3a   :  { %110 = vmax.xlane.f32.xlu1 %v109_v55 }
  0xb9   :  { %v90_v56 = vpop.xlane.xlu0 %89 }
  0xba   :  { %v112_v57 = vsub.f32 %v425_v4, %v90_v56  ;;  %v113_v58 = vsub.f32 %v427_v7, %v90_v56 }
  0xbb   :  { %v96_v59 = vpop.xlane.xlu1 %95 }
  0xbc   :  { %v116_v60 = vsub.f32 %v76_v11, %v96_v59  ;;  %v117_v61 = vsub.f32 %v77_v12, %v96_v59  ;;  %v128_v62 = vmul.f32 1.442695, %v112_v57  ;;  %v130_v63 = vmul.f32 1.442695, %v113_v58 }
  0xbd   :  { %v93_v2 = vpop.xlane.xlu0 %92 }
  0xbe   :  { %v136_v0 = vmul.f32 1.442695, %v116_v60  ;;  %v138_v1 = vmul.f32 1.442695, %v117_v61  ;;  %255 = vpow2.f32 %v128_v62  ;;  %v114_v3 = vsub.f32 %v431_v17, %v93_v2 }
  0xbf   :  { %v115_v5 = vsub.f32 %v433_v18, %v93_v2  ;;  %v99_v6 = vpop.xlane.xlu1 %98  ;;  %257 = vpow2.f32 %v130_v63 }
  0xc0   :  { %v118_v8 = vsub.f32 %v78_v24, %v99_v6  ;;  %v119_v9 = vsub.f32 %v79_v28, %v99_v6  ;;  %259 = vpow2.f32 %v136_v0  ;;  %v132_v4 = vmul.f32 1.442695, %v114_v3 }
  0xc1   :  { %v134_v7 = vmul.f32 1.442695, %v115_v5  ;;  %261 = vpow2.f32 %v138_v1  ;;  %v102_v12 = vpop.xlane.xlu0 %101 }
  0xc2   :  { %v140_v10 = vmul.f32 1.442695, %v118_v8  ;;  %v142_v11 = vmul.f32 1.442695, %v119_v9  ;;  %263 = vpow2.f32 %v132_v4  ;;  %v120_v13 = vsub.f32 %v437_v32, %v102_v12 }
  0xc3   :  { %v121_v14 = vsub.f32 %v439_v33, %v102_v12  ;;  %v105_v15 = vpop.xlane.xlu1 %104  ;;  %265 = vpow2.f32 %v134_v7 }
  0xc4   :  { %v122_v16 = vsub.f32 %v82_v38, %v105_v15  ;;  %v123_v17 = vsub.f32 %v83_v39, %v105_v15  ;;  %267 = vpow2.f32 %v140_v10  ;;  %v144_v18 = vmul.f32 1.442695, %v120_v13 }
  0xc5   :  { %v146_v19 = vmul.f32 1.442695, %v121_v14  ;;  %269 = vpow2.f32 %v142_v11  ;;  %v108_v22 = vpop.xlane.xlu0 %107 }
  0xc6   :  { %v148_v20 = vmul.f32 1.442695, %v122_v16  ;;  %v150_v21 = vmul.f32 1.442695, %v123_v17  ;;  %271 = vpow2.f32 %v144_v18  ;;  %v124_v23 = vsub.f32 %v84_v47, %v108_v22 }
  0xc7   :  { %v125_v24 = vsub.f32 %v85_v48, %v108_v22  ;;  %v111_v25 = vpop.xlane.xlu1 %110  ;;  %273 = vpow2.f32 %v146_v19 }
  0xc8   :  { %v126_v26 = vsub.f32 %v86_v52, %v111_v25  ;;  %v127_v27 = vsub.f32 %v87_v53, %v111_v25  ;;  %v256_v28 = vpop.eup %255  ;;  %275 = vpow2.f32 %v148_v20  ;;  %v152_v29 = vmul.f32 1.442695, %v124_v23 }
  0xc9   :  { %v154_v30 = vmul.f32 1.442695, %v125_v24  ;;  %v258_v31 = vpop.eup %257  ;;  %277 = vpow2.f32 %v150_v21 }
  0xca   :  { %v156_v32 = vmul.f32 1.442695, %v126_v26  ;;  %v158_v33 = vmul.f32 1.442695, %v127_v27  ;;  %v260_v34 = vpop.eup %259  ;;  %279 = vpow2.f32 %v152_v29  ;;  %v160_v35 = vadd.f32 %v258_v31, %v256_v28 }
  0xcb   :  { %v262_v36 = vpop.eup %261  ;;  %281 = vpow2.f32 %v154_v30 }
  0xcc   :  { %v264_v37 = vpop.eup %263  ;;  %283 = vpow2.f32 %v156_v32  ;;  %161 = vadd.xlane.f32.xlu0 %v160_v35  ;;  %v166_v38 = vadd.f32 %v262_v36, %v260_v34 }
  0xcd   :  { %v266_v39 = vpop.eup %265  ;;  %285 = vpow2.f32 %v158_v33 }
  0xce   :  { %v268_v40 = vpop.eup %267  ;;  %v163_v41 = vadd.f32 %v266_v39, %v264_v37 }
  0xcf   :  { %v270_v42 = vpop.eup %269 }
  0xd0   :  { %v272_v43 = vpop.eup %271  ;;  %167 = vadd.xlane.f32.xlu0 %v166_v38  ;;  %164 = vadd.xlane.f32.xlu1 %v163_v41  ;;  %v169_v44 = vadd.f32 %v270_v42, %v268_v40 }
  0xd1   :  { %v274_v45 = vpop.eup %273 }
  0xd2   :  { %v276_v46 = vpop.eup %275  ;;  %v172_v47 = vadd.f32 %v274_v45, %v272_v43 }
  0xd3   :  { %v278_v48 = vpop.eup %277 }
  0xd4   :  { %v280_v49 = vpop.eup %279  ;;  %170 = vadd.xlane.f32.xlu1 %v169_v44  ;;  %173 = vadd.xlane.f32.xlu0 %v172_v47  ;;  %v175_v50 = vadd.f32 %v278_v48, %v276_v46 }
  0xd5   :  { %v282_v51 = vpop.eup %281 }
  0xd6   :  { %v284_v52 = vpop.eup %283  ;;  %v178_v53 = vadd.f32 %v282_v51, %v280_v49 }
  0xd7   :  { %v286_v54 = vpop.eup %285 }
  0xd8   :  { %176 = vadd.xlane.f32.xlu1 %v175_v50  ;;  %179 = vadd.xlane.f32.xlu0 %v178_v53  ;;  %v181_v55 = vadd.f32 %v286_v54, %v284_v52 }
  0xdc   :  { %182 = vadd.xlane.f32.xlu1 %v181_v55 }
 0x159   :  { %v162_v56 = vpop.xlane.xlu0 %161 }
 0x15a   :  { %287 = vrcp.f32 %v162_v56 }
 0x15d   :  { %v165_v57 = vpop.xlane.xlu1 %164  ;;  %v168_v58 = vpop.xlane.xlu0 %167 }
 0x15e   :  { %289 = vrcp.f32 %v165_v57 }
 0x15f   :  { %291 = vrcp.f32 %v168_v58 }
 0x161   :  { %v171_v59 = vpop.xlane.xlu1 %170  ;;  %v174_v60 = vpop.xlane.xlu0 %173 }
 0x162   :  { %293 = vrcp.f32 %v171_v59 }
 0x163   :  { %295 = vrcp.f32 %v174_v60 }
 0x164   :  { %v288_v61 = vpop.eup %287 }
 0x165   :  { %v200_v62 = vmul.f32 %v288_v61, %v256_v28  ;;  %v201_v63 = vmul.f32 %v288_v61, %v258_v31  ;;  %v177_v0 = vpop.xlane.xlu1 %176  ;;  %v180_v1 = vpop.xlane.xlu0 %179 }
 0x166   :  { %297 = vrcp.f32 %v177_v0 }
 0x167   :  { %216 = vst [vmem:[#allocation7] sm:$0xff] %v200_v62  ;;  %217 = vst [vmem:[#allocation7 + $0x8] sm:$0xff] %v201_v63  ;;  %299 = vrcp.f32 %v180_v1 }
 0x168   :  { %v290_v2 = vpop.eup %289 }
 0x169   :  { %v292_v3 = vpop.eup %291  ;;  %v202_v5 = vmul.f32 %v290_v2, %v264_v37  ;;  %v203_v6 = vmul.f32 %v290_v2, %v266_v39  ;;  %v183_v8 = vpop.xlane.xlu1 %182 }
 0x16a   :  { %v204_v9 = vmul.f32 %v292_v3, %v260_v34  ;;  %v205_v4 = vmul.f32 %v292_v3, %v262_v36  ;;  %301 = vrcp.f32 %v183_v8 }
 0x16b   :  { %218 = vst [vmem:[#allocation7 + $0x10] sm:$0xff] %v202_v5  ;;  %219 = vst [vmem:[#allocation7 + $0x18] sm:$0xff] %v203_v6 }
 0x16c   :  { %v294_v7 = vpop.eup %293  ;;  %220 = vst [vmem:[#allocation7 + $0x20] sm:$0xff] %v204_v9  ;;  %221 = vst [vmem:[#allocation7 + $0x28] sm:$0xff] %v205_v4 }
 0x16d   :  { %v296_v10 = vpop.eup %295  ;;  %v206_v11 = vmul.f32 %v294_v7, %v268_v40  ;;  %v207_v12 = vmul.f32 %v294_v7, %v270_v42 }
 0x16e   :  { %v208_v13 = vmul.f32 %v296_v10, %v272_v43  ;;  %v209_v14 = vmul.f32 %v296_v10, %v274_v45 }
 0x16f   :  { %222 = vst [vmem:[#allocation7 + $0x30] sm:$0xff] %v206_v11  ;;  %223 = vst [vmem:[#allocation7 + $0x38] sm:$0xff] %v207_v12 }
 0x170   :  { %v298_v15 = vpop.eup %297  ;;  %224 = vst [vmem:[#allocation7 + $0x40] sm:$0xff] %v208_v13  ;;  %225 = vst [vmem:[#allocation7 + $0x48] sm:$0xff] %v209_v14 }
 0x171   :  { %v300_v16 = vpop.eup %299  ;;  %v210_v17 = vmul.f32 %v298_v15, %v276_v46  ;;  %v211_v18 = vmul.f32 %v298_v15, %v278_v48 }
 0x172   :  { %v212_v19 = vmul.f32 %v300_v16, %v280_v49  ;;  %v213_v20 = vmul.f32 %v300_v16, %v282_v51 }
 0x173   :  { %226 = vst [vmem:[#allocation7 + $0x50] sm:$0xff] %v210_v17  ;;  %227 = vst [vmem:[#allocation7 + $0x58] sm:$0xff] %v211_v18 }
 0x174   :  { %v302_v21 = vpop.eup %301  ;;  %228 = vst [vmem:[#allocation7 + $0x60] sm:$0xff] %v212_v19  ;;  %229 = vst [vmem:[#allocation7 + $0x68] sm:$0xff] %v213_v20 }
 0x175   :  { %v214_v22 = vmul.f32 %v302_v21, %v284_v52  ;;  %v215_v23 = vmul.f32 %v302_v21, %v286_v54 }
 0x177   :  { %230 = vst [vmem:[#allocation7 + $0x70] sm:$0xff] %v214_v22  ;;  %231 = vst [vmem:[#allocation7 + $0x78] sm:$0xff] %v215_v23 }
 0x178   :  { %358 = shalt.err (!%p355_p6)
}
 0x179   :  { %s359_s10 = scalar_lea.hbm %s466_s2, 2048 }
 0x17a   :  { %p360_p7 = scmp.ne.s32.totalorder %s466_s2, %s359_s10  ;;  %p363_p8 = scmp.lt.u32.totalorder %s359_s10, %s466_s2 }
 0x17c   :  { %p365_p9 = pnand %p363_p8, %p360_p7 }
 0x17e   :  { %368 = shalt.err (!%p365_p9)
}
 0x17f   :  { %243 = dma.vmem_to_hbm [thread:$0]  %s238_s6, 2048, %s466_s2, [#allocation4], %s376_s19, %s376_s19, %s377_s20  }
 0x180   :  { %373 = dma.done.wait [#allocation4], 2048  }
 0x181   :  { %374 = vsyncadd [#allocation4], 4294965248 }
 0x182   :  { %247 = vsyncpa [#allocation3], 1 }
 0x183   :  { %248 = vsyncpa [#allocation6], 1 }
 0x184   :  { %249 = vsyncpa [#allocation4], 1 }

</bundles_post_ra>
